<compile_context>
chip_gen: v7x
topology: tpu7x:2x2x1
jax: 0.10.0
libtpu: 0.0.40
codegen_flags: <defaults>
</compile_context>

<pallas_src>
import functools

import jax
import jax.numpy as jnp
from jax.experimental import pallas as pl
from jax.experimental.pallas import tpu as pltpu


def _infonce_kernel(zi_ref, zj_ref, zjd_ref, loss_ref, l_scr, pos_scr,
                    *, sim_bound, tk, resident_zj):
    k = pl.program_id(1)
    nk = pl.num_programs(1)

    zi = zi_ref[...]                       # (TQ, D), pre-normalized * 1/temp

    if resident_zj:
        # z_j lives in VMEM in full; slice the current key tile.
        align = tk if (tk & (tk - 1)) == 0 else 8
        off = pl.multiple_of(k * tk, align)
        zj = zj_ref[pl.ds(off, tk), :]     # (TK, D)
    else:
        zj = zj_ref[...]                   # (TK, D) streamed key tile

    @pl.when(k == 0)
    def _init():
        l_scr[...] = jnp.zeros_like(l_scr)
        # positive_sim = diag(sim) for this row tile == row-wise dot of the
        # matching rows of z_i and z_j: O(TQ*D), computed once per row tile,
        # accumulated in f32 (no mxu-dtype round-trip).
        pos_scr[...] = jnp.sum(
            zi.astype(jnp.float32) * zjd_ref[...].astype(jnp.float32),
            axis=-1, keepdims=True)

    # (TQ, TK) similarity tile on the MXU; contract the last dim of both
    # operands directly (no zj.T relayout), accumulate in f32.
    sim = jax.lax.dot_general(
        zi, zj, (((1,), (1,)), ((), ())),
        preferred_element_type=jnp.float32)

    # Streaming sum-exp with a STATIC max bound: rows are L2-normalized and
    # 1/temperature is folded into z_i, so sim <= sim_bound (= 1/temperature).
    # No online max, no rescale, single pass over the sim tile.
    l_scr[...] += jnp.sum(jnp.exp(sim - sim_bound), axis=-1, keepdims=True)

    @pl.when(k == nk - 1)
    def _finalize():
        loss_ref[...] = sim_bound + jnp.log(l_scr[...]) - pos_scr[...]


def _pick_tile(m, target, multiple=16):
    """Largest tile <= target that divides m; prefer multiples of `multiple`
    (bf16 sublane pack), fall back to multiples of 8, else the full dim."""
    if m <= target:
        return m
    start = target - target % multiple
    for t in range(start, multiple - 1, -multiple):
        if m % t == 0:
            return t
    start = target - target % 8
    for t in range(start, 7, -8):
        if m % t == 0:
            return t
    return m


def _vmem_capacity_bytes():
    try:
        return int(pltpu.get_tpu_info().vmem_capacity_bytes)
    except Exception:
        return 64 * 2**20   # conservative: v7x per-TensorCore VMEM


def infonce_loss_pallas(z_i, z_j, temperature=0.07, similarity_type="cosine",
                        *, mxu_dtype=jnp.bfloat16, tq=512, tk=256,
                        resident_zj=None):
    if similarity_type not in ("cosine", "dot"):
        raise ValueError(f"Invalid similarity type: {similarity_type}")
    # The reference torch module L2-normalizes and uses the identical matmul
    # for both 'cosine' and 'dot', so both branches map to this kernel.

    if z_i.ndim == 3:
        n, t, d = z_i.shape
        z_i = z_i.reshape(n * t, d)
        z_j = z_j.reshape(n * t, d)
    m, d = z_i.shape
    inv_temp = float(1.0 / temperature)

    # Normalize once in the wrapper (not per key-tile step inside the kernel),
    # fold 1/temperature into z_i, and cast to the MXU dtype at the source so
    # the dominant HBM stream (z_j) is already narrow.
    zi32 = z_i.astype(jnp.float32)
    zj32 = z_j.astype(jnp.float32)
    zi_n = zi32 * jax.lax.rsqrt(jnp.sum(zi32 * zi32, axis=-1, keepdims=True))
    zj_n = zj32 * jax.lax.rsqrt(jnp.sum(zj32 * zj32, axis=-1, keepdims=True))
    zi_in = (zi_n * inv_temp).astype(mxu_dtype)
    zj_in = zj_n.astype(mxu_dtype)

    itemsize = jnp.dtype(mxu_dtype).itemsize
    cap = _vmem_capacity_bytes()

    # Keep z_j fully VMEM-resident (read from HBM exactly once) when cheap.
    if resident_zj is None:
        resident_zj = (2 * m * d * itemsize) <= min(8 * 2**20, cap // 8)

    tq = _pick_tile(m, min(tq, m))
    tk = _pick_tile(m, min(tk, m))
    # v7x megacore: keep >= 2 row tiles so the 'parallel' row axis actually
    # spans both TensorCores (no-op on 1-TC v5e/v6e).
    if m // tq < 2 and m >= 256:
        cand = _pick_tile(m, m // 2)
        if cand < m:
            tq = cand

    def need(tq_, tk_):
        zj_bytes = (2 * m * d * itemsize) if resident_zj else (2 * tk_ * d * itemsize)
        return (2 * tq_ * d * itemsize          # z_i row tile (double-buffered)
                + zj_bytes                      # z_j (resident or key tile)
                + 2 * tq_ * d * itemsize        # z_j row tile (positives)
                + tq_ * tk_ * 4                 # f32 sim tile headroom
                + 2 * tq_ * 4 + 2 * tq_ * 4)    # output block + scratch

    budget = int(0.45 * cap)                    # respects v7x's 64 MiB VMEM
    for _ in range(16):
        if need(tq, tk) <= budget:
            break
        if tk >= tq and tk > 128:
            nt = _pick_tile(m, max(tk // 2, 128))
            if nt < tk:
                tk = nt
                continue
        if tq > 128:
            nt = _pick_tile(m, max(tq // 2, 128))
            if nt < tq:
                tq = nt
                continue
        break

    grid = (m // tq, m // tk)
    vmem_limit = int(min(0.75 * cap, max(2 * need(tq, tk), 32 * 2**20)))

    if resident_zj:
        zj_spec = pl.BlockSpec((m, d), lambda i, k: (0, 0))      # resident
    else:
        zj_spec = pl.BlockSpec((tk, d), lambda i, k: (k, 0))     # streamed

    kernel = functools.partial(
        _infonce_kernel,
        sim_bound=inv_temp,       # valid bound only because rows are normalized
        tk=tk,
        resident_zj=resident_zj)

    loss_rows = pl.pallas_call(
        kernel,
        out_shape=jax.ShapeDtypeStruct((m, 1), jnp.float32),
        grid_spec=pltpu.PrefetchScalarGridSpec(
            num_scalar_prefetch=0,
            grid=grid,
            in_specs=[
                pl.BlockSpec((tq, d), lambda i, k: (i, 0)),   # z_i row tile
                zj_spec,                                      # z_j keys
                pl.BlockSpec((tq, d), lambda i, k: (i, 0)),   # z_j row tile (positives)
            ],
            out_specs=pl.BlockSpec((tq, 1), lambda i, k: (i, 0)),
            scratch_shapes=[
                pltpu.VMEM((tq, 1), jnp.float32),   # running sum-exp
                pltpu.VMEM((tq, 1), jnp.float32),   # positive similarity
            ]),
        compiler_params=pltpu.CompilerParams(
            dimension_semantics=("parallel", "arbitrary"),
            vmem_limit_bytes=vmem_limit),
    )(zi_in, zj_in, zj_in)

    # Tiny final mean done in the wrapper keeps the row axis 'parallel'.
    return jnp.mean(loss_rows)


def _infonce_loss_ref(z_i, z_j, temperature=0.07):
    # Pure-JAX reference mirroring the torch code exactly (mask + logaddexp).
    if z_i.ndim == 3:
        n, t, d = z_i.shape
        z_i = z_i.reshape(n * t, d)
        z_j = z_j.reshape(n * t, d)
    z_i = z_i / jnp.linalg.norm(z_i, axis=-1, keepdims=True)
    z_j = z_j / jnp.linalg.norm(z_j, axis=-1, keepdims=True)
    sim = jnp.matmul(z_i, z_j.T, precision=jax.lax.Precision.HIGHEST) / temperature
    m = sim.shape[0]
    pos = jnp.diag(sim)
    neg = jnp.where(jnp.eye(m, dtype=bool), -jnp.inf, sim)
    lse_neg = jax.scipy.special.logsumexp(neg, axis=1)
    loss = -pos + jnp.logaddexp(pos, lse_neg)
    return loss.mean()


if __name__ == "__main__":
    key = jax.random.PRNGKey(0)
    k1, k2, k3, k4 = jax.random.split(key, 4)

    # Case 1: small (N=2, T=8, D=32) -> M=16, single tile, resident z_j, f32 MXU.
    z_i_s = jax.random.normal(k1, (2, 8, 32), dtype=jnp.float32)
    z_j_s = jax.random.normal(k2, (2, 8, 32), dtype=jnp.float32)
    ref_s = _infonce_loss_ref(z_i_s, z_j_s, temperature=0.07)
    out_s = infonce_loss_pallas(z_i_s, z_j_s, temperature=0.07,
                                mxu_dtype=jnp.float32)
    out_s = jax.block_until_ready(out_s)
    assert jnp.allclose(out_s, ref_s, rtol=1e-2, atol=1e-2), (out_s, ref_s)

    # Case 2: (N=4, T=64, D=32) -> M=256.
    z_i_l = jax.random.normal(k3, (4, 64, 32), dtype=jnp.float32)
    z_j_l = jax.random.normal(k4, (4, 64, 32), dtype=jnp.float32)
    ref_l = _infonce_loss_ref(z_i_l, z_j_l, temperature=0.07)

    # 2a: default config (bf16 inputs, auto tiles -> 2 row tiles, resident z_j).
    out_def = infonce_loss_pallas(z_i_l, z_j_l, temperature=0.07)
    out_def = jax.block_until_ready(out_def)
    assert jnp.allclose(out_def, ref_l, rtol=3e-2, atol=3e-2), (out_def, ref_l)

    # 2b: f32 MXU, multi key-tile resident path -> tight check of the
    #     static-bound streaming sum-exp accumulation across key steps.
    out_f32 = infonce_loss_pallas(z_i_l, z_j_l, temperature=0.07,
                                  mxu_dtype=jnp.float32, tq=128, tk=128)
    out_f32 = jax.block_until_ready(out_f32)
    assert jnp.allclose(out_f32, ref_l, rtol=1e-2, atol=1e-2), (out_f32, ref_l)

    # 2c: force the streamed (non-resident) z_j path to make sure both
    #     BlockSpec variants compile and agree.
    out_str = infonce_loss_pallas(z_i_l, z_j_l, temperature=0.07,
                                  mxu_dtype=jnp.float32, tq=128, tk=128,
                                  resident_zj=False)
    out_str = jax.block_until_ready(out_str)
    assert jnp.allclose(out_str, ref_l, rtol=1e-2, atol=1e-2), (out_str, ref_l)

    print("KERNEL_OK")
</pallas_src>

<mosaic_0001>
module attributes {stable_mosaic.version = 11 : i64} {
  func.func @_infonce_kernel(%arg0: i32, %arg1: i32, %arg2: memref<16x32xf32, #tpu.memory_space<vmem>>, %arg3: memref<16x32xf32, #tpu.memory_space<vmem>>, %arg4: memref<16x32xf32, #tpu.memory_space<vmem>>, %arg5: memref<16x1xf32, #tpu.memory_space<vmem>>, %arg6: memref<16x1xf32, #tpu.memory_space<vmem>>, %arg7: memref<16x1xf32, #tpu.memory_space<vmem>>) attributes {dimension_semantics = [#tpu.dimension_semantics<parallel>, #tpu.dimension_semantics<arbitrary>], iteration_bounds = array<i64: 1, 1>, scalar_prefetch = 0 : i64, scratch_operands = 2 : i64, tpu.core_type = #tpu.core_type<tc>, window_params = [{transform_indices = @transform_0, window_bounds = array<i64: 16, 32>}, {pipeline_mode = #tpu.pipeline_mode<synchronous>, transform_indices = @transform_1, window_bounds = array<i64: 16, 32>}, {transform_indices = @transform_2, window_bounds = array<i64: 16, 32>}, {transform_indices = @transform_3, window_bounds = array<i64: 16, 1>}]} {
    %c0 = arith.constant 0 : index
    %c0_0 = arith.constant 0 : index
    %0 = vector.load %arg2[%c0, %c0_0] : memref<16x32xf32, #tpu.memory_space<vmem>>, vector<16x32xf32>
    %c16_i32 = arith.constant 16 : i32
    %1 = arith.muli %arg1, %c16_i32 : i32
    %2 = tpu.assume_multiple %1, 16 : i32
    %3 = arith.index_cast %2 : i32 to index
    %c0_1 = arith.constant 0 : index
    %4 = vector.load %arg3[%3, %c0_1] : memref<16x32xf32, #tpu.memory_space<vmem>>, vector<16x32xf32>
    %c0_i32 = arith.constant 0 : i32
    %5 = arith.cmpi eq, %arg1, %c0_i32 : i32
    %6 = arith.extui %5 : i1 to i32
    %c0_i32_2 = arith.constant 0 : i32
    %7 = arith.cmpi ne, %6, %c0_i32_2 : i32
    scf.if %7 {
      %cst_11 = arith.constant 0.000000e+00 : f32
      %20 = vector.broadcast %cst_11 : f32 to vector<16x1xf32>
      %c0_12 = arith.constant 0 : index
      %c0_13 = arith.constant 0 : index
      %21 = vector.load %arg6[%c0_12, %c0_13] : memref<16x1xf32, #tpu.memory_space<vmem>>, vector<16x1xf32>
      tpu.vector_store %arg6[%c0_12, %c0_13], %20 {strides = array<i32>} : memref<16x1xf32, #tpu.memory_space<vmem>>, vector<16x1xf32>,
      %c0_14 = arith.constant 0 : index
      %c0_15 = arith.constant 0 : index
      %22 = vector.load %arg4[%c0_14, %c0_15] : memref<16x32xf32, #tpu.memory_space<vmem>>, vector<16x32xf32>
      %23 = arith.mulf %0, %22 : vector<16x32xf32>
      %cst_16 = arith.constant dense<0.000000e+00> : vector<16xf32>
      %24 = vector.multi_reduction <add>, %23, %cst_16 [1] : vector<16x32xf32> to vector<16xf32>
      %25 = vector.shape_cast %24 : vector<16xf32> to vector<16x1xf32>
      %c0_17 = arith.constant 0 : index
      %c0_18 = arith.constant 0 : index
      %26 = vector.load %arg7[%c0_17, %c0_18] : memref<16x1xf32, #tpu.memory_space<vmem>>, vector<16x1xf32>
      tpu.vector_store %arg7[%c0_17, %c0_18], %25 {strides = array<i32>} : memref<16x1xf32, #tpu.memory_space<vmem>>, vector<16x1xf32>,
    } else {
    }
    %cst = arith.constant dense<0.000000e+00> : vector<16x16xf32>
    %8 = tpu.matmul %0, %4, %cst {dimension_numbers = #tpu.dot_dimension_numbers<[1], [1], [0], [0], [0, 0, 1, 0], [], []>} : vector<16x32xf32>, vector<16x32xf32>, vector<16x16xf32> -> vector<16x16xf32>
    %c0_3 = arith.constant 0 : index
    %c0_4 = arith.constant 0 : index
    %9 = vector.load %arg6[%c0_3, %c0_4] : memref<16x1xf32, #tpu.memory_space<vmem>>, vector<16x1xf32>
    %cst_5 = arith.constant 14.2857141 : f32
    %10 = vector.broadcast %cst_5 : f32 to vector<16x16xf32>
    %11 = arith.subf %8, %10 : vector<16x16xf32>
    %12 = math.exp %11 : vector<16x16xf32>
    %cst_6 = arith.constant dense<0.000000e+00> : vector<16xf32>
    %13 = vector.multi_reduction <add>, %12, %cst_6 [1] : vector<16x16xf32> to vector<16xf32>
    %14 = vector.shape_cast %13 : vector<16xf32> to vector<16x1xf32>
    %15 = arith.addf %9, %14 : vector<16x1xf32>
    %c0_7 = arith.constant 0 : index
    %c0_8 = arith.constant 0 : index
    %16 = vector.load %arg6[%c0_7, %c0_8] : memref<16x1xf32, #tpu.memory_space<vmem>>, vector<16x1xf32>
    tpu.vector_store %arg6[%c0_7, %c0_8], %15 {strides = array<i32>} : memref<16x1xf32, #tpu.memory_space<vmem>>, vector<16x1xf32>,
    %c0_i32_9 = arith.constant 0 : i32
    %17 = arith.cmpi eq, %arg1, %c0_i32_9 : i32
    %18 = arith.extui %17 : i1 to i32
    %c0_i32_10 = arith.constant 0 : i32
    %19 = arith.cmpi ne, %18, %c0_i32_10 : i32
    scf.if %19 {
      %c0_11 = arith.constant 0 : index
      %c0_12 = arith.constant 0 : index
      %20 = vector.load %arg6[%c0_11, %c0_12] : memref<16x1xf32, #tpu.memory_space<vmem>>, vector<16x1xf32>
      %21 = math.log %20 : vector<16x1xf32>
      %cst_13 = arith.constant 14.2857141 : f32
      %22 = vector.broadcast %cst_13 : f32 to vector<16x1xf32>
      %23 = arith.addf %22, %21 : vector<16x1xf32>
      %c0_14 = arith.constant 0 : index
      %c0_15 = arith.constant 0 : index
      %24 = vector.load %arg7[%c0_14, %c0_15] : memref<16x1xf32, #tpu.memory_space<vmem>>, vector<16x1xf32>
      %25 = arith.subf %23, %24 : vector<16x1xf32>
      %c0_16 = arith.constant 0 : index
      %c0_17 = arith.constant 0 : index
      %26 = vector.load %arg5[%c0_16, %c0_17] : memref<16x1xf32, #tpu.memory_space<vmem>>, vector<16x1xf32>
      tpu.vector_store %arg5[%c0_16, %c0_17], %25 {strides = array<i32>} : memref<16x1xf32, #tpu.memory_space<vmem>>, vector<16x1xf32>,
    } else {
    }
    return
  }
  func.func @transform_0(%arg0: i32, %arg1: i32) -> (i32, i32) {
    %c0_i32 = arith.constant 0 : i32
    %c0_i32_0 = arith.constant 0 : i32
    return %arg0, %c0_i32 : i32, i32
  }
  func.func @transform_1(%arg0: i32, %arg1: i32) -> (i32, i32) {
    %c0_i32 = arith.constant 0 : i32
    %c0_i32_0 = arith.constant 0 : i32
    %c0_i32_1 = arith.constant 0 : i32
    return %c0_i32, %c0_i32_0 : i32, i32
  }
  func.func @transform_2(%arg0: i32, %arg1: i32) -> (i32, i32) {
    %c0_i32 = arith.constant 0 : i32
    %c0_i32_0 = arith.constant 0 : i32
    return %arg0, %c0_i32 : i32, i32
  }
  func.func @transform_3(%arg0: i32, %arg1: i32) -> (i32, i32) {
    %c0_i32 = arith.constant 0 : i32
    %c0_i32_0 = arith.constant 0 : i32
    return %arg0, %c0_i32 : i32, i32
  }
}

</mosaic_0001>

<bundles_post_ra>
// kernel: tpu_custom_call.1
= control target key start
LH: loop header
LB: loop body
LE: loop exit
PB: predicated region body
PF: predicated region fallthrough
CT: control target
= control target key end

     0   :  { %8 = vsyncpa [#allocation5], 0  ;;  %s417_s0 = inlined_call_operand.hbm [shape: f32[16,32], index: 0, kind: input, shape index: {}]   ;;  %s418_s1 = inlined_call_operand.hbm [shape: f32[16,32], index: 1, kind: input, shape index: {}]   ;;  %s419_s2 = inlined_call_operand.hbm [shape: f32[16,32], index: 2, kind: input, shape index: {}]   ;;  %s420_s3 = inlined_call_operand.vmem [shape: f32[16,1], index: 3, kind: output, shape index: {}]  }
   0x1   :  { %9 = vsyncpa [#allocation7], 0  ;;  %s319_s12 = smov [#allocation6]   ;;  %s320_s14 = smov [#allocation4]  }
   0x2   :  { %s27_s13 = sshll.u32 %s319_s12, 4  ;;  %s15_s15 = sshll.u32 %s320_s14, 4  ;;  %s28_s13 = int_to_ptr.vmem [resolvable:$true] %s27_s13  ;;  %s345_s15 = int_to_ptr.vmem [resolvable:$true] %s15_s15 }
   0x3   :  { %s249_s18 = scalar_lea.hbm %s418_s1, 256 }
   0x4   :  { %p250_p0 = scmp.ne.s32.totalorder %s418_s1, %s249_s18  ;;  %p253_p1 = scmp.lt.u32.totalorder %s249_s18, %s418_s1 }
   0x6   :  { %p255_p2 = pnand %p253_p1, %p250_p0 }
   0x8   :  { %258 = shalt.err (!%p255_p2)
}
   0x9   :  { %s259_s23 = scalar_lea.vmem %s28_s13, 256  ;;  %p264_p4 = scmp.lt.s32.totalorder %s28_s13, %s28_s13 }
   0xa   :  { %p260_p3 = scmp.ne.s32.totalorder %s28_s13, %s259_s23  ;;  %p265_p5 = scmp.lt.s32.totalorder %s259_s23, %s259_s23 }
   0xc   :  { %p266_p6 = por %p265_p5, %p264_p4 }
   0xe   :  { %p267_p7 = pnand %p266_p6, %p260_p3 }
  0x10   :  { %270 = shalt.err (!%p267_p7)
}
  0x11   :  { %s321_s24 = smov 128   ;;  %s322_s25 = smov 8  }
  0x12   :  { %33 = dma.hbm_to_vmem [thread:$0]  %s418_s1, 256, %s28_s13, [#allocation7], %s321_s24, %s321_s24, %s322_s25  }
  0x13   :  { %s271_s30 = scalar_lea.hbm %s417_s0, 256 }
  0x14   :  { %p272_p8 = scmp.ne.s32.totalorder %s417_s0, %s271_s30  ;;  %p275_p9 = scmp.lt.u32.totalorder %s271_s30, %s417_s0 }
  0x16   :  { %p277_p10 = pnand %p275_p9, %p272_p8 }
  0x18   :  { %280 = shalt.err (!%p277_p10)
}
  0x19   :  { %s281_s8 = scalar_lea.vmem %s345_s15, 256  ;;  %p286_p12 = scmp.lt.s32.totalorder %s345_s15, %s345_s15 }
  0x1a   :  { %p282_p11 = scmp.ne.s32.totalorder %s345_s15, %s281_s8  ;;  %p287_p13 = scmp.lt.s32.totalorder %s281_s8, %s281_s8 }
  0x1c   :  { %p288_p0 = por %p287_p13, %p286_p12 }
  0x1e   :  { %p289_p1 = pnand %p288_p0, %p282_p11 }
  0x20   :  { %292 = shalt.err (!%p289_p1)
}
  0x21   :  { %21 = dma.hbm_to_vmem [thread:$0]  %s417_s0, 256, %s345_s15, [#allocation5], %s321_s24, %s321_s24, %s322_s25  }
  0x22   :  { %s323_s10 = smov [#allocation8]   ;;  %s293_s14 = scalar_lea.hbm %s419_s2, 256 }
  0x23   :  { %s39_s11 = sshll.u32 %s323_s10, 4  ;;  %p294_p2 = scmp.ne.s32.totalorder %s419_s2, %s293_s14  ;;  %s40_s11 = int_to_ptr.vmem [resolvable:$true] %s39_s11 }
  0x24   :  { %p297_p3 = scmp.lt.u32.totalorder %s293_s14, %s419_s2 }
  0x26   :  { %p299_p4 = pnand %p297_p3, %p294_p2 }
  0x28   :  { %302 = shalt.err (!%p299_p4)
}
  0x29   :  { %s303_s20 = scalar_lea.vmem %s40_s11, 256  ;;  %p308_p6 = scmp.lt.s32.totalorder %s40_s11, %s40_s11 }
  0x2a   :  { %p304_p5 = scmp.ne.s32.totalorder %s40_s11, %s303_s20  ;;  %p309_p7 = scmp.lt.s32.totalorder %s303_s20, %s303_s20 }
  0x2c   :  { %p310_p8 = por %p309_p7, %p308_p6 }
  0x2e   :  { %p311_p9 = pnand %p310_p8, %p304_p5 }
  0x30   :  { %314 = shalt.err (!%p311_p9)
}
  0x31   :  { %45 = dma.hbm_to_vmem [thread:$0]  %s419_s2, 256, %s40_s11, [#allocation7], %s321_s24, %s321_s24, %s322_s25  }
  0x32   :  { %315 = dma.done.wait [#allocation5], 256  }
  0x33   :  { %316 = vsyncadd [#allocation5], 4294967040 }
  0x34   :  { %317 = dma.done.wait [#allocation7], 512  }
  0x35   :  { %318 = vsyncadd [#allocation7], 4294966784  ;;  %vm72_vm0 = vcmask 261120   ;;  %v59_v0 = vld [vmem:[#allocation6] sm:$0xff]  ;;  %v60_v1 = vld [vmem:[#allocation6 + $0x8] sm:$0xff]  ;;  %vm65_vm2 = vcmask 7168  }
  0x36   :  { %vm230_vm1 = vmpackc.low %vm72_vm0, %vm72_vm0  ;;  %v55_v2 = vld [vmem:[#allocation4] sm:$0xff]  ;;  %v229_v3 = vpack.c.bf16 %v60_v1, %v59_v0  ;;  %v56_v4 = vld [vmem:[#allocation4 + $0x8] sm:$0xff]  ;;  %v324_v10 = vmov 0.0   ;;  %vm177_vm3 = vcmask 130048  }
  0x37   :  { %226 = vmatprep.mubr.msk.f32.mxu0 %vm72_vm0, %v55_v2  ;;  %v68_v5 = vld [vmem:[#allocation8] sm:$0xff]  ;;  %v69_v8 = vld [vmem:[#allocation8 + $0x8] sm:$0xff]  ;;  %66 = vst.msk [vmem:[#allocation2] sm:$0xff] %vm65_vm2, %v324_v10  ;;  %67 = vst.msk [vmem:[#allocation2 + $0x8] sm:$0xff] %vm65_vm2, %v324_v10 }
  0x38   :  { %231 = vmatprep.subr.msk.bf16.mxu0 %vm230_vm1, %v229_v3  ;;  %v70_v6 = vmul.f32 %v68_v5, %v55_v2  ;;  %v71_v9 = vmul.f32 %v69_v8, %v56_v4 }
  0x39   :  { %234 = vmatpush3.bf16.xpose.msk.msra.mxu0 %vm230_vm1, %v229_v3 }
  0x3a   :  { %v73_v7 = vsel %vm72_vm0, %v70_v6, 0.0  ;;  %v76_v11 = vsel %vm72_vm0, %v71_v9, 0.0 }
  0x3b   :  { %74 = vadd.xlane.f32.xlu1 %v73_v7 }
  0x3e   :  { %v169_v24 = vld [vmem:[#allocation2] sm:$0xff]  ;;  %v170_v27 = vld [vmem:[#allocation2 + $0x8] sm:$0xff] }
  0x3f   :  { %77 = vadd.xlane.f32.xlu1 %v76_v11 }
  0x40   :  { %227 = vmatmul.mubr.msk.f32.vlgmr.msra.gmra.mrb[0].mxu0 %vm72_vm0, %v56_v4 }
  0xc8   :  { %v75_v22 = vpop.xlane.xlu1 %74 }
  0xc9   :  { %79 = vst.msk [vmem:[#allocation3] sm:$0xff] %vm65_vm2, %v75_v22 }
  0xcc   :  { %v78_v23 = vpop.xlane.xlu1 %77 }
  0xcd   :  { %80 = vst.msk [vmem:[#allocation3 + $0x8] sm:$0xff] %vm65_vm2, %v78_v23 }
  0xd0   :  { %v200_v34 = vld [vmem:[#allocation3] sm:$0xff] }
  0xd4   :  { %v201_v39 = vld [vmem:[#allocation3 + $0x8] sm:$0xff] }
 0x113   :  { %v228_v12 = vpop.f32.mrb[0].mxu0 }
 0x114   :  { %v217_v13 = vadd.f32 -14.285714, %v228_v12  ;;  %v160_v14 = vpop.f32.mrb[1].mxu0 }
 0x115   :  { %v216_v15 = vadd.f32 -14.285714, %v160_v14 }
 0x116   :  { %v175_v16 = vmul.f32 1.442695, %v217_v13 }
 0x117   :  { %v173_v17 = vmul.f32 1.442695, %v216_v15 }
 0x119   :  { %241 = vpow2.f32 %v173_v17 }
 0x11a   :  { %243 = vpow2.f32 %v175_v16 }
 0x123   :  { %v242_v18 = vpop.eup %241 }
 0x124   :  { %v178_v19 = vsel %vm177_vm3, %v242_v18, 0.0  ;;  %v244_v20 = vpop.eup %243 }
 0x125   :  { %179 = vadd.xlane.f32.xlu0 %v178_v19  ;;  %v181_v21 = vsel %vm177_vm3, %v244_v20, 0.0 }
 0x129   :  { %182 = vadd.xlane.f32.xlu0 %v181_v21 }
 0x1b2   :  { %v180_v25 = vpop.xlane.xlu0 %179 }
 0x1b3   :  { %v184_v26 = vadd.f32 %v180_v25, %v169_v24 }
 0x1b5   :  { %187 = vst.msk [vmem:[#allocation2] sm:$0xff] %vm65_vm2, %v184_v26 }
 0x1b6   :  { %v183_v28 = vpop.xlane.xlu0 %182 }
 0x1b7   :  { %v185_v29 = vadd.f32 %v183_v28, %v170_v27 }
 0x1b9   :  { %188 = vst.msk [vmem:[#allocation2 + $0x8] sm:$0xff] %vm65_vm2, %v185_v29 }
 0x1bc   :  { %v192_v30 = vld [vmem:[#allocation2] sm:$0xff] }
 0x1bd   :  { %245 = vlog2.f32 %v192_v30 }
 0x1c0   :  { %v193_v31 = vld [vmem:[#allocation2 + $0x8] sm:$0xff] }
 0x1c1   :  { %247 = vlog2.f32 %v193_v31 }
 0x1c7   :  { %v246_v32 = vpop.eup %245 }
 0x1c8   :  { %v195_v33 = vmul.f32 0.6931472, %v246_v32 }
 0x1ca   :  { %v198_v35 = vadd.f32 14.285714, %v195_v33 }
 0x1cb   :  { %v248_v36 = vpop.eup %247 }
 0x1cc   :  { %v202_v37 = vsub.f32 %v198_v35, %v200_v34  ;;  %v197_v38 = vmul.f32 0.6931472, %v248_v36 }
 0x1ce   :  { %204 = vst.msk [vmem:[%s420_s3] sm:$0xff] %vm65_vm2, %v202_v37  ;;  %v199_v40 = vadd.f32 14.285714, %v197_v38 }
 0x1d0   :  { %v203_v41 = vsub.f32 %v199_v40, %v201_v39 }
 0x1d2   :  { %205 = vst.msk [vmem:[%s420_s3 + $0x8] sm:$0xff] %vm65_vm2, %v203_v41 }
 0x1d3   :  { %210 = vsyncpa [#allocation5], 1 }
 0x1d4   :  { %211 = vsyncpa [#allocation7], 1 }

</bundles_post_ra>
